<compile_context>
chip_gen: v5e
topology: v5e:2x2
jax: 0.10.0
libtpu: 0.0.40
codegen_flags: <defaults>
</compile_context>

<pallas_src>
import jax
import jax.numpy as jnp
from jax.experimental import pallas as pl
from jax.experimental.pallas import tpu as pltpu


def _linear_kernel(x_ref, w_ref, b_ref, o_ref):
    # y = x @ W + b : MXU matmul with f32 accumulation; bias add in f32
    # (v5e's VPU has no bf16), then cast to the output dtype.
    acc = jnp.dot(x_ref[...], w_ref[...], preferred_element_type=jnp.float32)
    o_ref[...] = (acc + b_ref[...].astype(jnp.float32)).astype(o_ref.dtype)


def _vmem_budget_bytes():
    # Per-generation VMEM: 128 MiB (v5e/v6e) / 64 MiB per TC (v7x). Request
    # up to half of physical VMEM as the scoped limit (capped at 64 MiB).
    try:
        cap = pltpu.get_tpu_info().vmem_capacity_bytes
    except Exception:
        cap = 64 << 20
    return min(cap // 2, 64 << 20)


def _sublane_multiple(dtype):
    # f32 -> 8, bf16 -> 16, int8 -> 32 (sub-32-bit dtypes pack along sublanes).
    return 8 * max(1, 4 // jnp.dtype(dtype).itemsize)


def regression_forward(x, w, b, *, max_tile_rows=None):
    """Pallas equivalent of nn.Linear(input_dim, out_dim).forward.

    x: [B, input_dim], w: [input_dim, out_dim], b: [1, out_dim] -> [B, out_dim]
    `max_tile_rows` optionally caps the batch tile (used to exercise the
    gridded path in tests).
    """
    B, K = x.shape
    N = w.shape[1]
    out_dtype = x.dtype
    itemsize = jnp.dtype(out_dtype).itemsize

    # ---- Lane-dense packing (kills masked output stores) -------------------
    pack = 1
    if N < 128 and 128 % N == 0:
        p = 128 // N
        if B % p == 0 and p * K <= 4096:
            pack = p

    if pack > 1:
        xp = x.reshape(B // pack, pack * K)          # contiguous view: free
        wp = jnp.zeros((pack * K, pack * N), w.dtype)
        for i in range(pack):                        # tiny block-diag weight
            wp = wp.at[i * K:(i + 1) * K, i * N:(i + 1) * N].set(w)
        bp = jnp.tile(b, (1, pack))
    else:
        xp, wp, bp = x, w, b

    Bp, Kp = xp.shape
    Np = wp.shape[1]

    vmem_limit = _vmem_budget_bytes()
    cost = pl.CostEstimate(
        flops=2 * B * K * N,
        bytes_accessed=(xp.size + wp.size + bp.size + Bp * Np) * itemsize,
        transcendentals=0,
    )

    sub = _sublane_multiple(out_dtype)
    row_bytes = (Kp + Np) * itemsize                 # one x row + one out row
    resident_bytes = (wp.size + bp.size) * itemsize  # w/b stay resident
    budget = int(vmem_limit * 0.45)                  # headroom for compiler

    # ---- Single-tile (grid-less) path ---------------------------------------
    single_tile_rows = max(sub, (budget - resident_bytes) // max(row_bytes, 1))
    if max_tile_rows is not None:
        single_tile_rows = min(single_tile_rows, max_tile_rows)

    if Bp <= single_tile_rows:
        out_p = pl.pallas_call(
            _linear_kernel,
            out_shape=jax.ShapeDtypeStruct((Bp, Np), out_dtype),
            in_specs=[
                pl.BlockSpec(xp.shape, lambda: (0, 0)),
                pl.BlockSpec(wp.shape, lambda: (0, 0)),
                pl.BlockSpec(bp.shape, lambda: (0, 0)),
            ],
            out_specs=pl.BlockSpec((Bp, Np), lambda: (0, 0)),
            compiler_params=pltpu.CompilerParams(vmem_limit_bytes=vmem_limit),
            cost_estimate=cost,
        )(xp, wp, bp)
        return out_p.reshape(B, N) if pack > 1 else out_p

    # ---- Gridded path (huge B): double-buffered x/out tiles -----------------
    # Biggest tile that fits with double-buffering, then round the step count
    # up to an even number >= 2 so ("parallel",) can split across both
    # TensorCores on v7x.
    max_rows = max(sub, (budget - resident_bytes) // max(2 * row_bytes, 1))
    if max_tile_rows is not None:
        max_rows = min(max_rows, max_tile_rows)
    num_steps = pl.cdiv(Bp, max_rows)
    num_steps = max(2, num_steps + (num_steps % 2))
    tile_rows = pl.cdiv(Bp, num_steps)
    tile_rows = ((tile_rows + sub - 1) // sub) * sub
    tile_rows = min(tile_rows, Bp)

    grid = (pl.cdiv(Bp, tile_rows),)
    out_p = pl.pallas_call(
        _linear_kernel,
        out_shape=jax.ShapeDtypeStruct((Bp, Np), out_dtype),
        grid=grid,
        in_specs=[
            pl.BlockSpec((tile_rows, Kp), lambda i: (i, 0)),
            pl.BlockSpec((Kp, Np), lambda i: (0, 0)),
            pl.BlockSpec((1, Np), lambda i: (0, 0)),
        ],
        out_specs=pl.BlockSpec((tile_rows, Np), lambda i: (i, 0)),
        compiler_params=pltpu.CompilerParams(
            dimension_semantics=("parallel",),
            vmem_limit_bytes=vmem_limit),
        cost_estimate=cost,
    )(xp, wp, bp)
    return out_p.reshape(B, N) if pack > 1 else out_p


if __name__ == "__main__":
    # Small shapes implied by the module: batch=8, input_dim=32, out_dim=16.
    batch, input_dim, out_dim = 8, 32, 16

    key = jax.random.PRNGKey(0)
    kx, kw, kb, kxb = jax.random.split(key, 4)

    # Deterministic init (mimics nn.Linear's uniform(-1/sqrt(in), 1/sqrt(in)))
    bound = 1.0 / jnp.sqrt(jnp.float32(input_dim))
    w = jax.random.uniform(kw, (input_dim, out_dim), jnp.float32, -bound, bound)
    b = jax.random.uniform(kb, (1, out_dim), jnp.float32, -bound, bound)

    # 1) Module's natural small shape: packed, grid-less single tile.
    x = jax.random.normal(kx, (batch, input_dim), dtype=jnp.float32)
    y = regression_forward(x, w, b)
    jax.block_until_ready(y)
    y_ref = x @ w + b
    assert jnp.allclose(y, y_ref, atol=1e-5, rtol=1e-5), "mismatch (small)"

    # 2) Larger batch: still a single packed tile (HBM/overhead-bound regime).
    xb = jax.random.normal(kxb, (4096, input_dim), dtype=jnp.float32)
    yb = regression_forward(xb, w, b)
    jax.block_until_ready(yb)
    yb_ref = xb @ w + b
    assert jnp.allclose(yb, yb_ref, atol=1e-5, rtol=1e-5), "mismatch (single-tile)"

    # 3) Exercise the gridded (double-buffered, megacore-parallel) path once
    #    by capping the tile size.
    yg = regression_forward(xb, w, b, max_tile_rows=128)
    jax.block_until_ready(yg)
    assert jnp.allclose(yg, yb_ref, atol=1e-5, rtol=1e-5), "mismatch (gridded)"

    print("KERNEL_OK")
</pallas_src>

<mosaic_0001>
module attributes {stable_mosaic.version = 11 : i64} {
  func.func @_linear_kernel(%arg0: memref<1x256xf32, #tpu.memory_space<vmem>>, %arg1: memref<256x128xf32, #tpu.memory_space<vmem>>, %arg2: memref<1x128xf32, #tpu.memory_space<vmem>>, %arg3: memref<1x128xf32, #tpu.memory_space<vmem>>) attributes {dimension_semantics = [], scalar_prefetch = 0 : i64, scratch_operands = 0 : i64, tpu.core_type = #tpu.core_type<tc>} {
    %c0 = arith.constant 0 : index
    %c0_0 = arith.constant 0 : index
    %0 = vector.load %arg0[%c0, %c0_0] : memref<1x256xf32, #tpu.memory_space<vmem>>, vector<1x256xf32>
    %c0_1 = arith.constant 0 : index
    %c0_2 = arith.constant 0 : index
    %1 = vector.load %arg1[%c0_1, %c0_2] : memref<256x128xf32, #tpu.memory_space<vmem>>, vector<256x128xf32>
    %cst = arith.constant dense<0.000000e+00> : vector<1x128xf32>
    %2 = tpu.matmul %0, %1, %cst {dimension_numbers = #tpu.dot_dimension_numbers<[1], [0], [0], [1], [0, 0, 1, 1], [], []>} : vector<1x256xf32>, vector<256x128xf32>, vector<1x128xf32> -> vector<1x128xf32>
    %c0_3 = arith.constant 0 : index
    %c0_4 = arith.constant 0 : index
    %3 = vector.load %arg2[%c0_3, %c0_4] : memref<1x128xf32, #tpu.memory_space<vmem>>, vector<1x128xf32>
    %4 = arith.addf %2, %3 : vector<1x128xf32>
    %c0_5 = arith.constant 0 : index
    %c0_6 = arith.constant 0 : index
    %5 = vector.load %arg3[%c0_5, %c0_6] : memref<1x128xf32, #tpu.memory_space<vmem>>, vector<1x128xf32>
    tpu.vector_store %arg3[%c0_5, %c0_6], %4 {strides = array<i32>} : memref<1x128xf32, #tpu.memory_space<vmem>>, vector<1x128xf32>,
    return
  }
}

</mosaic_0001>

<bundles_post_ra>
// kernel: tpu_custom_call.1
= control target key start
LH: loop header
LB: loop body
LE: loop exit
PB: predicated region body
PF: predicated region fallthrough
CT: control target
= control target key end

     0   :  { %8 = vsyncpa [#allocation3], 0  ;;  %s263_s0 = inlined_call_operand.hbm [shape: f32[1,256], index: 0, kind: input, shape index: {}]   ;;  %s264_s1 = inlined_call_operand.hbm [shape: f32[256,128], index: 1, kind: input, shape index: {}]   ;;  %s265_s2 = inlined_call_operand.vmem [shape: f32[1,128], index: 2, kind: input, shape index: {}]   ;;  %s266_s3 = inlined_call_operand.hbm [shape: f32[1,128], index: 3, kind: output, shape index: {}]  }
   0x1   :  { %9 = vsyncpa [#allocation6], 0 }
   0x2   :  { %10 = vsyncpa [#allocation4], 0  ;;  %s16_s14 = sshll.u32 %s263_s0, 4  ;;  %s226_s15 = smov [#allocation2]   ;;  %s17_s14 = int_to_ptr.hbm [resolvable:$true] %s16_s14 }
   0x3   :  { %s18_s16 = sshll.u32 %s226_s15, 4  ;;  %s26_s19 = sshll.u32 %s264_s1, 4  ;;  %s19_s16 = int_to_ptr.vmem [resolvable:$true] %s18_s16  ;;  %s27_s19 = int_to_ptr.hbm [resolvable:$true] %s26_s19 }
   0x4   :  { %21 = dma.hbm_to_vmem [thread:$0]  %s17_s14, 32, %s19_s16, [#allocation3]  }
   0x5   :  { %s227_s20 = smov [#allocation5]   ;;  %s228_s22 = smov 128  }
   0x6   :  { %s28_s21 = sshll.u32 %s227_s20, 4  ;;  %s229_s23 = smov 8   ;;  %s29_s21 = int_to_ptr.vmem [resolvable:$true] %s28_s21 }
   0x7   :  { %34 = dma.hbm_to_vmem [thread:$0]  %s27_s19, 4096, %s29_s21, [#allocation6], %s228_s22, %s228_s22, %s229_s23  }
   0x8   :  { %220 = dma.done.wait [#allocation3], 32  }
   0x9   :  { %221 = vsyncadd [#allocation3], 4294967264 }
   0xa   :  { %222 = dma.done.wait [#allocation6], 4096  }
   0xb   :  { %223 = vsyncadd [#allocation6], 4294963200  ;;  %v61_v0 = vld [vmem:[#allocation5 + $0x78] sm:$0xff]  ;;  %v60_v1 = vld [vmem:[#allocation5 + $0x70] sm:$0xff]  ;;  %s230_s24 = smov [#allocation7]   ;;  %s132_s28 = sshll.u32 %s266_s3, 4  ;;  %s133_s28 = int_to_ptr.hbm [resolvable:$true] %s132_s28 }
   0xc   :  { %v77_v2 = vld [vmem:[#allocation5 + $0xf8] sm:$0xff]  ;;  %84 = vmatpush.msra.mxu0 %v61_v0  ;;  %v76_v3 = vld [vmem:[#allocation5 + $0xf0] sm:$0xff]  ;;  %v59_v4 = vld [vmem:[#allocation5 + $0x68] sm:$0xff]  ;;  %s130_s25 = sshll.u32 %s230_s24, 4  ;;  %s131_s25 = int_to_ptr.vmem [resolvable:$true] %s130_s25 }
   0xd   :  { %104 = vmatpush.msra.mxu1 %v77_v2  ;;  %v75_v5 = vld [vmem:[#allocation5 + $0xe8] sm:$0xff]  ;;  %v58_v6 = vld [vmem:[#allocation5 + $0x60] sm:$0xff]  ;;  %v57_v8 = vld [vmem:[#allocation5 + $0x58] sm:$0xff] }
   0xe   :  { %85 = vmatpush.msra.mxu0 %v60_v1  ;;  %v74_v7 = vld [vmem:[#allocation5 + $0xe0] sm:$0xff]  ;;  %v73_v9 = vld [vmem:[#allocation5 + $0xd8] sm:$0xff]  ;;  %v56_v10 = vld [vmem:[#allocation5 + $0x50] sm:$0xff] }
   0xf   :  { %105 = vmatpush.msra.mxu1 %v76_v3  ;;  %v72_v11 = vld [vmem:[#allocation5 + $0xd0] sm:$0xff]  ;;  %v55_v12 = vld [vmem:[#allocation5 + $0x48] sm:$0xff]  ;;  %v54_v14 = vld [vmem:[#allocation5 + $0x40] sm:$0xff] }
  0x10   :  { %86 = vmatpush.msra.mxu0 %v59_v4  ;;  %v71_v13 = vld [vmem:[#allocation5 + $0xc8] sm:$0xff]  ;;  %v70_v15 = vld [vmem:[#allocation5 + $0xc0] sm:$0xff]  ;;  %v53_v16 = vld [vmem:[#allocation5 + $0x38] sm:$0xff] }
  0x11   :  { %106 = vmatpush.msra.mxu1 %v75_v5  ;;  %v69_v17 = vld [vmem:[#allocation5 + $0xb8] sm:$0xff]  ;;  %v52_v18 = vld [vmem:[#allocation5 + $0x30] sm:$0xff]  ;;  %v51_v20 = vld [vmem:[#allocation5 + $0x28] sm:$0xff] }
  0x12   :  { %87 = vmatpush.msra.mxu0 %v58_v6  ;;  %v68_v19 = vld [vmem:[#allocation5 + $0xb0] sm:$0xff]  ;;  %v67_v21 = vld [vmem:[#allocation5 + $0xa8] sm:$0xff]  ;;  %v50_v22 = vld [vmem:[#allocation5 + $0x20] sm:$0xff] }
  0x13   :  { %107 = vmatpush.msra.mxu1 %v74_v7  ;;  %v66_v23 = vld [vmem:[#allocation5 + $0xa0] sm:$0xff]  ;;  %v49_v24 = vld [vmem:[#allocation5 + $0x18] sm:$0xff]  ;;  %v48_v26 = vld [vmem:[#allocation5 + $0x10] sm:$0xff] }
  0x14   :  { %88 = vmatpush.msra.mxu0 %v57_v8  ;;  %v65_v25 = vld [vmem:[#allocation5 + $0x98] sm:$0xff]  ;;  %v64_v27 = vld [vmem:[#allocation5 + $0x90] sm:$0xff]  ;;  %v47_v29 = vld [vmem:[#allocation5 + $0x8] sm:$0xff] }
  0x15   :  { %108 = vmatpush.msra.mxu1 %v73_v9  ;;  %v45_v28 = vld [vmem:[#allocation2] sm:$0x3]  ;;  %v63_v30 = vld [vmem:[#allocation5 + $0x88] sm:$0xff]  ;;  %v46_v31 = vld [vmem:[#allocation5] sm:$0xff] }
  0x16   :  { %89 = vmatpush.msra.mxu0 %v56_v10  ;;  %v80_v32 = vperm.slane %v45_v28, 0  ;;  %v62_v33 = vld [vmem:[#allocation5 + $0x80] sm:$0xff]  ;;  %v81_v34 = vperm.slane %v45_v28, 1  ;;  %v78_v35 = vld [vmem:[%s265_s2] sm:$0x1] }
  0x17   :  { %109 = vmatpush.msra.mxu1 %v72_v11 }
  0x18   :  { %90 = vmatpush.msra.mxu0 %v55_v12 }
  0x19   :  { %110 = vmatpush.msra.mxu1 %v71_v13 }
  0x1a   :  { %91 = vmatpush.msra.mxu0 %v54_v14 }
  0x1b   :  { %111 = vmatpush.msra.mxu1 %v70_v15 }
  0x1c   :  { %92 = vmatpush.msra.mxu0 %v53_v16 }
  0x1d   :  { %112 = vmatpush.msra.mxu1 %v69_v17 }
  0x1e   :  { %93 = vmatpush.msra.mxu0 %v52_v18 }
  0x1f   :  { %113 = vmatpush.msra.mxu1 %v68_v19 }
  0x20   :  { %94 = vmatpush.msra.mxu0 %v51_v20 }
  0x21   :  { %114 = vmatpush.msra.mxu1 %v67_v21 }
  0x22   :  { %95 = vmatpush.msra.mxu0 %v50_v22 }
  0x23   :  { %115 = vmatpush.msra.mxu1 %v66_v23 }
  0x24   :  { %96 = vmatpush.msra.mxu0 %v49_v24 }
  0x25   :  { %116 = vmatpush.msra.mxu1 %v65_v25 }
  0x26   :  { %97 = vmatpush.msra.mxu0 %v48_v26 }
  0x27   :  { %117 = vmatpush.msra.mxu1 %v64_v27 }
  0x28   :  { %98 = vmatpush.msra.mxu0 %v47_v29 }
  0x29   :  { %118 = vmatpush.msra.mxu1 %v63_v30 }
  0x2a   :  { %99 = vmatpush.msra.mxu0 %v46_v31 }
  0x2b   :  { %119 = vmatpush.msra.mxu1 %v62_v33  ;;  %100 = vmatmul.f32.vlgmr.msra.gmra.mxu0 %v80_v32 }
  0x2c   :  { %120 = vmatmul.f32.vlgmr.msra.gmra.mxu1 %v81_v34 }
  0xa8   :  { %v101_v36 = vpop.f32.mrf.mxu0 }
  0xa9   :  { %v121_v37 = vpop.f32.mrf.mxu1  ;;  %v102_v38 = vadd.f32 %v101_v36, %v78_v35 }
  0xab   :  { %v122_v39 = vadd.f32 %v121_v37, %v102_v38 }
  0xad   :  { %124 = vst [vmem:[#allocation7] sm:$0x1] %v122_v39 }
  0xae   :  { %135 = dma.vmem_to_hbm [thread:$0]  %s131_s25, 16, %s133_s28, [#allocation4]  }
  0xaf   :  { %224 = dma.done.wait [#allocation4], 16  }
  0xb0   :  { %225 = vsyncadd [#allocation4], 4294967280 }
  0xb1   :  { %140 = vsyncpa [#allocation3], 1 }
  0xb2   :  { %141 = vsyncpa [#allocation6], 1 }
  0xb3   :  { %142 = vsyncpa [#allocation4], 1 }

</bundles_post_ra>
